<compile_context>
chip_gen: v5e
topology: v5e:2x2
jax: 0.10.0
libtpu: 0.0.40
codegen_flags: <defaults>
</compile_context>

<pallas_src>
import jax
import jax.numpy as jnp
from jax.experimental import pallas as pl
from jax.experimental.pallas import tpu as pltpu


def _shuffle_copy_kernel(x_ref, o_ref):
    # x_ref: (BT, 1, CPG, LT); o_ref: (BT, CPG, LT).
    # Pure copy: the channel-shuffle permutation is done by the BlockSpec
    # index maps, so this is a single aligned load + unmasked lane-dense store.
    o_ref[...] = x_ref[:, 0, :, :]


def _vmem_budgets():
    """Return (per_block_budget_bytes, vmem_limit_bytes) for this TPU generation."""
    phys = 64 << 20  # conservative default = v7x per-TensorCore VMEM
    try:
        info = pltpu.get_tpu_info()
        phys = int(getattr(info, "vmem_capacity_bytes", phys))
    except Exception:
        pass
    # Keep the double-buffered in+out footprint (~4 live blocks) within about
    # half of physical VMEM: 32 MiB scoped on v7x (64 MiB phys), 64 MiB on
    # v5e/v6e (128 MiB phys).  Setting vmem_limit_bytes also lifts v5e's
    # 16 MiB scoped default.
    vmem_limit = min(phys // 2, 96 << 20)
    per_block = vmem_limit // 5  # 2x in + 2x out double-buffered, plus headroom
    return per_block, vmem_limit


def _pick_tiles(n, cpg, l_pad, itemsize, per_block_budget):
    """Pick (lt, bt): lane-tile (multiple of 128 dividing l_pad) and batch fold."""
    cands = sorted(
        {t for t in (l_pad, 16384, 8192, 4096, 2048, 1024, 512, 256, 128)
         if t <= l_pad and l_pad % t == 0},
        reverse=True)
    lt = cands[-1]  # 128 always divides l_pad
    for t in cands:
        if cpg * t * itemsize <= per_block_budget:
            lt = t
            break
    # Fold as much of the batch per block as fits (largest divisor of N):
    # amortizes per-grid-step overhead with zero extra HBM traffic.
    bt = 1
    for d in range(n, 0, -1):
        if n % d == 0 and d * cpg * lt * itemsize <= per_block_budget:
            bt = d
            break
    return lt, bt


def channel_shuffle_1d(x, groups):
    """x: (N, C, L). Returns the channel-shuffled (N, C, L), same dtype."""
    N, C, L = x.shape
    if C % groups != 0:
        raise ValueError("channels must be divisible by groups")
    if groups == 1:
        return x
    cpg = C // groups
    itemsize = jnp.dtype(x.dtype).itemsize

    # Ragged L: pad the lane axis to a multiple of 128 so every shape takes
    # the lane-dense DMA path, then slice.  Padding only touches the L axis,
    # which the channel permutation leaves untouched, so it commutes exactly.
    L_pad = ((L + 127) // 128) * 128
    xw = x if L_pad == L else jnp.pad(x, ((0, 0), (0, 0), (0, L_pad - L)))

    per_block_budget, vmem_limit = _vmem_budgets()
    lt, bt = _pick_tiles(N, cpg, L_pad, itemsize, per_block_budget)
    nlt = L_pad // lt

    x4 = xw.reshape(N, groups, cpg, L_pad)  # free (contiguous) view
    out3 = pl.pallas_call(
        _shuffle_copy_kernel,
        out_shape=jax.ShapeDtypeStruct((N, cpg, groups * L_pad), x.dtype),
        grid=(N // bt, groups, nlt),
        in_specs=[pl.BlockSpec((bt, 1, cpg, lt),
                               lambda b, g, t: (b, g, 0, t))],
        out_specs=pl.BlockSpec((bt, cpg, lt),
                               lambda b, g, t: (b, 0, g * nlt + t)),
        compiler_params=pltpu.CompilerParams(
            dimension_semantics=("parallel", "parallel", "parallel"),
            vmem_limit_bytes=vmem_limit),
        cost_estimate=pl.CostEstimate(
            flops=0, transcendentals=0,
            bytes_accessed=2 * N * C * L_pad * itemsize),
    )(x4)
    out = out3.reshape(N, C, L_pad)  # free (contiguous) view
    return out if L_pad == L else out[:, :, :L]


def _reference(x, groups):
    """Pure-JAX reference matching the PyTorch forward."""
    N, C, L = x.shape
    cpg = C // groups
    y = x.reshape(N, groups, cpg, L)
    y = jnp.transpose(y, (0, 2, 1, 3))
    return y.reshape(N, C, L)


if __name__ == "__main__":
    keys = jax.random.split(jax.random.PRNGKey(0), 3)

    # Primary config: lane-dense L (multiple of 128).
    N, C, L, groups = 2, 16, 128, 4
    x = jax.random.normal(keys[0], (N, C, L), jnp.float32)
    out = jax.block_until_ready(channel_shuffle_1d(x, groups))
    ref = _reference(x, groups)
    assert out.shape == (N, C, L)
    assert jnp.array_equal(out, ref), float(jnp.max(jnp.abs(out - ref)))

    # Ragged L (takes the pad-and-slice route onto the same DMA path).
    x2 = jax.random.normal(keys[1], (2, 12, 96), jnp.float32)
    out2 = jax.block_until_ready(channel_shuffle_1d(x2, 3))
    assert jnp.array_equal(out2, _reference(x2, 3))

    # Sub-32-bit dtype, larger lane extent (exercises tile/batch-fold pick).
    x3 = jax.random.normal(keys[2], (4, 8, 256), jnp.float32).astype(jnp.bfloat16)
    out3 = jax.block_until_ready(channel_shuffle_1d(x3, 2))
    assert jnp.array_equal(out3, _reference(x3, 2))

    print("KERNEL_OK")
</pallas_src>

<mosaic_0001>
module attributes {stable_mosaic.version = 11 : i64} {
  func.func @_shuffle_copy_kernel(%arg0: i32, %arg1: i32, %arg2: i32, %arg3: memref<2x1x4x128xf32, #tpu.memory_space<vmem>>, %arg4: memref<2x4x128xf32, #tpu.memory_space<vmem>>) attributes {dimension_semantics = [#tpu.dimension_semantics<parallel>, #tpu.dimension_semantics<parallel>, #tpu.dimension_semantics<parallel>], iteration_bounds = array<i64: 1, 4, 1>, scalar_prefetch = 0 : i64, scratch_operands = 0 : i64, tpu.core_type = #tpu.core_type<tc>, window_params = [{transform_indices = @transform_0, window_bounds = array<i64: 2, 1, 4, 128>}, {transform_indices = @transform_1, window_bounds = array<i64: 2, 4, 128>}]} {
    %c0 = arith.constant 0 : index
    %c0_0 = arith.constant 0 : index
    %c0_1 = arith.constant 0 : index
    %c0_2 = arith.constant 0 : index
    %0 = vector.load %arg3[%c0, %c0_0, %c0_1, %c0_2] : memref<2x1x4x128xf32, #tpu.memory_space<vmem>>, vector<2x1x4x128xf32>
    %1 = vector.shape_cast %0 : vector<2x1x4x128xf32> to vector<2x4x128xf32>
    %c0_3 = arith.constant 0 : index
    %c0_4 = arith.constant 0 : index
    %c0_5 = arith.constant 0 : index
    %2 = vector.load %arg4[%c0_3, %c0_4, %c0_5] : memref<2x4x128xf32, #tpu.memory_space<vmem>>, vector<2x4x128xf32>
    tpu.vector_store %arg4[%c0_3, %c0_4, %c0_5], %1 {strides = array<i32>} : memref<2x4x128xf32, #tpu.memory_space<vmem>>, vector<2x4x128xf32>,
    return
  }
  func.func @transform_0(%arg0: i32, %arg1: i32, %arg2: i32) -> (i32, i32, i32, i32) {
    %c0_i32 = arith.constant 0 : i32
    %c0_i32_0 = arith.constant 0 : i32
    return %arg0, %arg1, %c0_i32, %arg2 : i32, i32, i32, i32
  }
  func.func @transform_1(%arg0: i32, %arg1: i32, %arg2: i32) -> (i32, i32, i32) {
    %c1_i32 = arith.constant 1 : i32
    %0 = arith.muli %arg1, %c1_i32 : i32
    %1 = arith.addi %0, %arg2 : i32
    %c0_i32 = arith.constant 0 : i32
    %c0_i32_0 = arith.constant 0 : i32
    return %arg0, %c0_i32, %1 : i32, i32, i32
  }
}

</mosaic_0001>

<bundles_post_ra>
// kernel: tpu_custom_call.1
= control target key start
LH: loop header
LB: loop body
LE: loop exit
PB: predicated region body
PF: predicated region fallthrough
CT: control target
= control target key end

     0   :  { %6 = vsyncpa [#allocation3], 0  ;;  %s612_s0 = inlined_call_operand.hbm [shape: f32[2,4,4,128], index: 0, kind: input, shape index: {}]   ;;  %s613_s1 = inlined_call_operand.hbm [shape: f32[2,4,512], index: 1, kind: output, shape index: {}]  }
   0x1   :  { %8 = vsyncpa [#allocation3 + $0x1], 0 }
   0x2   :  { %9 = vsyncpa [#allocation4], 0 }
   0x3   :  { %11 = vsyncpa [#allocation4 + $0x1], 0  ;;  %s494_s6 = smov 0   ;;  %s496_s7 = smov 0  }
   0x4   :  { %s498_s8 = smov 0   ;;  %s500_s9 = smov 0  }
   0x5   :  { %s502_s10 = smov 0   ;;  %s504_s11 = smov 0  }
   0x6 LB: > { %s283_s12 = sadd.s32 4294967295, %s476_s11   ;;  %s284_s13 = sadd.s32 4294967294, %s476_s11   ;;  %s476_s11 = sphi %s504_s11, %s17_s11   ;;  %s472_s10 = sphi %s502_s10, %s622_s10   ;;  %s468_s9 = sphi %s500_s9, %s621_s9   ;;  %s464_s8 = sphi %s498_s8, %s620_s8   ;;  %s460_s7 = sphi %s496_s7, %s619_s7   ;;  %s456_s6 = sphi %s494_s6, %s618_s6  }
   0x7   : > { %s32_s14 = sadd.s32 1, %s472_s10  ;;  %s47_s15 = sadd.s32 1, %s464_s8 }
   0x8   : > { %p34_p0 = scmp.ge.s32.totalorder %s32_s14, 4  ;;  %p54_p1 = scmp.ne.s32.totalorder %s464_s8, %s460_s7 }
   0x9   : > { %p55_p2 = scmp.eq.s32.totalorder %s476_s11, 0  ;;  %p60_p3 = scmp.ne.s32.totalorder %s460_s7, %s456_s6 }
   0xa   : > { %s624_s14 = smov (%p34_p0, %s32_s14), 0  ;;  %p61_p5 = scmp.eq.s32.totalorder %s283_s12, 0 }
   0xb   : > { %p535_p4 = por %p55_p2, %p54_p1  ;;  %s41_s17 = ssub.s32 %s472_s10, %s624_s14 }
   0xc   : > { %p88_p6 = scmp.eq.s32.totalorder %s283_s12, 3  ;;  %p45_p7 = scmp.eq.s32.totalorder %s41_s17, 0 }
   0xd   : > { %p541_p8 = por %p61_p5, %p60_p3  ;;  %p94_p10 = scmp.eq.s32.totalorder %s284_s13, 3 }
   0xe   : > { %p545_p9 = por %p88_p6, %p54_p1  ;;  %p308_p12 = scmp.lt.s32.totalorder %s476_s11, 4 }
   0xf   : > { %s550_s20 = scalar_select %p45_p7, %s464_s8, %s47_s15  }
  0x10   : > { %p552_p11 = por %p94_p10, %p60_p3  ;;  %s114_s22 = sand.u32 1, %s464_s8  }
  0x11   : > { %s287_s23 = sshll.u32 %s114_s22, 3  ;;  %s288_s24 = sshll.u32 %s472_s10, 2 }
  0x12   : > { %s126_s27 = scalar_lea.hbm %s612_s0, %s288_s24  ;;  %s118_s28 = scalar_lea.vmem [#allocation2], %s287_s23 }
  0x13   : > { %s129_s29 = sshll.u32 %s118_s28, 4  ;;  %s127_s30 = sshll.u32 %s126_s27, 4  ;;  %s130_s29 = int_to_ptr.vmem [resolvable:$true] %s129_s29  ;;  %s128_s30 = int_to_ptr.hbm [resolvable:$true] %s127_s30 }
  0x14   : > { %p301_p13 = pnand %p308_p12, %p535_p4  ;;  %s115_s2 = scalar_lea.sflag [#allocation3], %s114_s22 }
  0x15   : > { %s478_s3 = smov 256   ;;  %s479_s4 = smov 64  }
  0x16   : > { %s480_s5 = smov 4   ;;  %p289_p0 = scmp.ge.s32.totalorder %s476_s11, 1 }
  0x17   : > { %303 = dma.hbm_to_vmem [thread:$0]  (!%p301_p13), %s128_s30, 128, %s130_s29, %s115_s2, %s478_s3, %s479_s4, %s480_s5  }
  0x18   : > { %p137_p1 = scmp.lt.s32.totalorder %s476_s11, 5 }
  0x1a   : > { %p138_p2 = pnand %p289_p0, %p137_p1 }
  0x1b   : > { %s567_s12 = sand.u32 (!%p138_p2), 1, %s460_s7  }
  0x1c   : > { %141 = sbr.rel (%p138_p2) target bundleno = 51 (0x33), region = 24  ;;  %s290_s13 = sshll.u32 (!%p138_p2), %s567_s12, 3 }
  0x1d   : > { %s144_s15 = scalar_lea.sflag (!%p138_p2), [#allocation3], %s567_s12  ;;  %s147_s17 = scalar_lea.vmem (!%p138_p2), [#allocation2], %s290_s13 }
  0x21   : > { %447 = dma.done.wait (%p541_p8), %s144_s15, 128  }
  0x22   : > { %449 = vsyncadd (%p541_p8), %s144_s15, 4294967168  ;;  %s166_s16 = scalar_lea.vmem [#allocation5], %s290_s13  ;;  %s293_s23 = sshll.u32 %s468_s9, 2  ;;  %v170_v0 = vld [vmem:[%s147_s17] sm:$0xff]  }
  0x23   : > { %s190_s22 = sshll.u32 %s166_s16, 4  ;;  %s189_s26 = scalar_lea.hbm %s613_s1, %s293_s23  ;;  %172 = vst [vmem:[%s166_s16] sm:$0xff] %v170_v0   ;;  %s191_s22 = int_to_ptr.vmem [resolvable:$true] %s190_s22 }
  0x24   : > { %s192_s27 = sshll.u32 %s189_s26, 4  ;;  %s175_s28 = scalar_lea.sflag [#allocation4], %s567_s12  ;;  %s193_s27 = int_to_ptr.hbm [resolvable:$true] %s192_s27 }
  0x25   : > { %s408_s29 = sshra.s32 %s193_s27, 4  ;;  %s414_s9 = scalar_lea.hbm %s613_s1, 32  ;;  %s409_s29 = int_to_ptr.hbm [resolvable:$true] %s408_s29 }
  0x26   : > { %s410_s18 = scalar_lea.hbm %s409_s29, 8  ;;  %p415_p6 = scmp.lt.s32.totalorder %s409_s29, %s613_s1 }
  0x27   : > { %p411_p3 = scmp.ne.s32.totalorder %s409_s29, %s410_s18  ;;  %p416_p7 = scmp.lt.s32.totalorder %s414_s9, %s410_s18 }
  0x29   : > { %p412_p4 = pnand %p411_p3, %p545_p9  ;;  %p417_p8 = por %p416_p7, %p415_p6 }
  0x2b   : > { %p413_p5 = pneg %p412_p4 }
  0x2d   : > { %p418_p10 = pnand %p417_p8, %p413_p5 }
  0x2f   : > { %421 = shalt.err (!%p418_p10)
}
  0x30   : > { %s481_s5 = smov 64   ;;  %s482_s12 = smov 256  }
  0x31   : > { %s483_s13 = smov 4  }
  0x32   : > { %298 = dma.vmem_to_hbm [thread:$0]  (%p545_p9), %s191_s22, 128, %s193_s27, %s175_s28, %s481_s5, %s482_s12, %s483_s13  }
  0x33 PF: > { %p309_p12 = scmp.ge.s32.totalorder %s476_s11, 2  ;;  %s207_s15 = sand.u32 1, %s456_s6  }
  0x34   : > { %s208_s17 = scalar_lea.sflag [#allocation4], %s207_s15 }
  0x35   : > { %p305_p13 = pnand %p309_p12, %p552_p11 }
  0x37   : > { %p306_p0 = pneg %p305_p13 }
  0x39   : > { %451 = dma.done.wait (%p306_p0), %s208_s17, 128  }
  0x3a   : > { %453 = vsyncadd (%p306_p0), %s208_s17, 4294967168  ;;  %s17_s11 = sadd.s32 1, %s476_s11   ;;  %s618_s6 = smov %s460_s7 }
  0x3b   : > { %p14_p1 = scmp.ge.s32.totalorder %s17_s11, 6   ;;  %s619_s7 = smov %s464_s8 }
  0x3c   : > { %s620_s8 = smov %s550_s20  ;;  %s621_s9 = smov %s472_s10 }
  0x3d   : > { %s622_s10 = smov %s624_s14  ;;  %16 = sbr.rel (!%p14_p1) target bundleno = 6 (0x6), region = 69 }
  0x42   :  { %214 = vsyncpa [#allocation3], 1 }
  0x43   :  { %216 = vsyncpa [#allocation3 + $0x1], 1 }
  0x44   :  { %217 = vsyncpa [#allocation4], 1 }
  0x45   :  { %219 = vsyncpa [#allocation4 + $0x1], 1 }

</bundles_post_ra>
